<compile_context>
chip_gen: v7x
topology: tpu7x:2x2x1
jax: 0.10.0
libtpu: 0.0.40
codegen_flags: <defaults>
</compile_context>

<pallas_src>
import numpy as np

import jax
import jax.numpy as jnp
from jax.experimental import pallas as pl
from jax.experimental.pallas import tpu as pltpu

CP = 8      # channel padding = one f32 sublane tile (all channel dims here <= 8)
IN_CH = 3   # RGB input / output channels of the network

# Tap ordering: the 9 offsets of the inner 3x3 window first (row-major), then
# the 16 remaining offsets of the 5x5 window.  branch3 / branch_pool use the
# first 9 taps, branch5 uses all 25.  Index 4 is the centre tap (0, 0).
TAPS9 = [(oh, ow) for oh in (-1, 0, 1) for ow in (-1, 0, 1)]
TAPS25 = TAPS9 + [(oh, ow) for oh in range(-2, 3) for ow in range(-2, 3)
                  if not (abs(oh) <= 1 and abs(ow) <= 1)]

K1 = 256    # lane-aligned contraction of the 25-tap matmul (rows 0:200 live)
K2 = 128    # lane-aligned contraction of the 9-tap matmul  (rows 0:72  live)


# --------------------------------------------------------------------------
# one-time probe: pin down pltpu.roll direction so tap offsets are unambiguous
# --------------------------------------------------------------------------
_ROLL_IS_NUMPY_LIKE = None


def _roll_is_numpy_like():
    global _ROLL_IS_NUMPY_LIKE
    if _ROLL_IS_NUMPY_LIKE is None:
        def probe(x_ref, o_ref):
            o_ref[...] = pltpu.roll(x_ref[...], 1, axis=1)

        x = jnp.tile(jnp.arange(128, dtype=jnp.float32)[None, :], (8, 1))
        out = pl.pallas_call(
            probe,
            out_shape=jax.ShapeDtypeStruct((8, 128), jnp.float32),
            in_specs=[pl.BlockSpec(memory_space=pltpu.MemorySpace.VMEM)],
            out_specs=pl.BlockSpec(memory_space=pltpu.MemorySpace.VMEM),
        )(x)
        first = float(out[0, 0])
        if first == 127.0:      # out[i] = in[i - shift]  (np.roll semantics)
            _ROLL_IS_NUMPY_LIKE = True
        elif first == 1.0:      # out[i] = in[i + shift]
            _ROLL_IS_NUMPY_LIKE = False
        else:
            raise RuntimeError(f"unexpected pltpu.roll behaviour: {first}")
    return _ROLL_IS_NUMPY_LIKE


# --------------------------------------------------------------------------
# parameter preprocessing (done ONCE; the residual-stack weights are shared
# across all `layers`, exactly as in the PyTorch module)
# --------------------------------------------------------------------------
def _tap_masks_hw(H, W):
    hh = np.arange(H)[:, None]
    ww = np.arange(W)[None, :]
    rows = []
    for oh, ow in TAPS25:
        valid = ((hh + oh >= 0) & (hh + oh < H) &
                 (ww + ow >= 0) & (ww + ow < W))
        rows.append(valid.reshape(-1))
    return np.stack(rows).astype(np.float32)          # (25, H*W)


def _compose_block(p, cin, cout, masks_j):
    """Fold one Inception block into:
       Wbig (2*CP, K1): 25-tap composite weight.  rows 0:CP -> 0.25*(branch1 +
                        branch5 + branch_pool); rows CP:   -> branch3 mid (its
                        1x1 folded into the first 3x3).  cols 200:K1 are zero.
       WB   (CP, K2)  : 0.25 * second 3x3 of branch3 (9 taps); cols 72:K2 are
                        EXACT zeros (the 9-tap matmul relies on this).
       bfd  (CP, HW)  : per-pixel bias field of the direct path (x0.25).
       bfm  (CP, HW)  : per-pixel bias field of the branch3 intermediate.
       The bias *fields* give boundary-exact handling of the inner 1x1 biases
       that are zeroed by the intermediate zero padding in PyTorch."""
    HW = masks_j.shape[1]
    h2 = p["b3_w2"].shape[0]
    assert cin <= CP and cout <= CP and h2 <= CP

    oh25 = jnp.array([t[0] for t in TAPS25])
    ow25 = jnp.array([t[1] for t in TAPS25])
    oh9, ow9 = oh25[:9], ow25[:9]

    # branch5: fold its 1x1 into the 5x5 -> per-tap (cout, cin)
    B25 = p["b5_w2"][:, :, oh25 + 2, ow25 + 2]                  # (cout, h0, 25)
    Wd = 0.25 * jnp.einsum("ohk,hi->koi", B25, p["b5_w1"])      # (25, cout, cin)
    # branch_pool: avg_pool(3x3, count_include_pad) + 1x1 == 9 taps of bp_w/9
    Wd = Wd.at[:9].add(0.25 * p["bp_w"] / 9.0)
    # branch1: 1x1 == centre tap (index 4 of TAPS9)
    Wd = Wd.at[4].add(0.25 * p["b1_w"])

    # branch3 stage A: fold its 1x1 into the first 3x3 -> per-tap (h2, cin)
    D9 = p["b3_w2"][:, :, oh9 + 1, ow9 + 1]                     # (h2, h1, 9)
    Wm = jnp.einsum("ohk,hi->koi", D9, p["b3_w1"])              # (9, h2, cin)

    Wbig = jnp.zeros((2 * CP, 25, CP), jnp.float32)
    Wbig = Wbig.at[:cout, :, :cin].set(jnp.transpose(Wd, (1, 0, 2)))
    Wbig = Wbig.at[CP:CP + h2, :9, :cin].set(jnp.transpose(Wm, (1, 0, 2)))
    Wbig = jnp.zeros((2 * CP, K1), jnp.float32).at[:, :25 * CP].set(
        Wbig.reshape(2 * CP, 25 * CP))

    # branch3 stage B: second 3x3 over the (zero-padded) intermediate
    E9 = p["b3_w3"][:, :, oh9 + 1, ow9 + 1]                     # (cout, h2, 9)
    WB = jnp.zeros((CP, 9, CP), jnp.float32)
    WB = WB.at[:cout, :, :h2].set(0.25 * jnp.transpose(E9, (0, 2, 1)))
    WB = jnp.zeros((CP, K2), jnp.float32).at[:, :9 * CP].set(WB.reshape(CP, 9 * CP))

    # bias fields (per-pixel pattern only; batch-tiled inside the kernel)
    bf5 = jnp.einsum("km,ohk,h->om", masks_j, B25, p["b5_b1"])      # (cout, HW)
    bconst = p["b1_b"] + p["b5_b2"] + p["bp_b"] + p["b3_b3"]        # (cout,)
    bfd_hw = 0.25 * (bf5 + bconst[:, None])
    bfd = jnp.zeros((CP, HW), jnp.float32).at[:cout].set(bfd_hw)

    bfm_hw = (jnp.einsum("km,ohk,h->om", masks_j[:9], D9, p["b3_b1"])
              + p["b3_b2"][:, None])                                 # (h2, HW)
    bfm = jnp.zeros((CP, HW), jnp.float32).at[:h2].set(bfm_hw)

    return Wbig, WB, bfd, bfm


def precompute_kernel_params(params, N, H, W, channels):
    masks_hw = _tap_masks_hw(H, W)                       # np (25, HW)
    masks_j = jnp.asarray(masks_hw)
    # un-replicated masks: one f32 row per tap, tiled over the batch only
    masks_m = jnp.asarray(np.tile(masks_hw, (1, N)))     # (25, N*H*W)
    return {
        "masks": masks_m,
        "in": _compose_block(params["in_conv"], IN_CH, channels, masks_j),
        "res": _compose_block(params["conv"], channels, channels, masks_j),
        "out": _compose_block(params["out_conv"], channels, IN_CH, masks_j),
    }


# --------------------------------------------------------------------------
# the fused kernel
# --------------------------------------------------------------------------
def _build_kernel(N, H, W, layers, roll_numpy_like):
    HW = H * W
    M = N * HW

    def shifted(v, d):
        # out[:, m] = v[:, (m + d) % M]; wrapped lanes are masked by the caller.
        dd = d % M
        if dd == 0:
            return v
        amt = (M - dd) if roll_numpy_like else dd
        return pltpu.roll(v, amt, axis=1)

    def kernel(x_ref, masks_ref,
               wi_ref, wbi_ref, bdi_ref, bmi_ref,
               wr_ref, wbr_ref, bdr_ref, bmr_ref,
               wo_ref, wbo_ref, bdo_ref, bmo_ref,
               out_ref, p_ref):
        x = x_ref[...]                                   # (CP, M), lane-dense f32

        # Zero ONLY the K-padding rows of the im2col slab, once (they are never
        # written again).  Rows 0:200 are always freshly filled before use.
        p_ref[25 * CP:K1, :] = jnp.zeros((K1 - 25 * CP, M), jnp.float32)

        def tile_n(v):                                   # (CP, HW) -> (CP, M)
            return v if N == 1 else jnp.concatenate([v] * N, axis=1)

        # bias fields: stored N-deduplicated, tiled across the batch once here
        bdi = tile_n(bdi_ref[...]); bmi = tile_n(bmi_ref[...])
        bdr = tile_n(bdr_ref[...]); bmr = tile_n(bmr_ref[...])
        bdo = tile_n(bdo_ref[...]); bmo = tile_n(bmo_ref[...])

        def fill_patches(src, ntaps):
            # im2col: rows k*CP:(k+1)*CP of p_ref hold the (oh,ow)-shifted,
            # boundary-masked copy of `src`.  All stores are (8,128)-aligned
            # and lane-dense.  Masks are un-replicated (25, M); the (1, M) row
            # sublane-broadcasts in the multiply.
            for k in range(ntaps):
                oh, ow = TAPS25[k]
                if oh == 0 and ow == 0:
                    # centre tap: always valid -> no roll, no mask multiply.
                    p_ref[k * CP:(k + 1) * CP, :] = src
                else:
                    mask = masks_ref[k:k + 1, :]
                    p_ref[k * CP:(k + 1) * CP, :] = (
                        shifted(src, oh * W + ow) * mask)

        def inception(src, wbig_ref, wb_ref, bfd, bfm):
            fill_patches(src, 25)
            t = jnp.dot(wbig_ref[...], p_ref[...],
                        preferred_element_type=jnp.float32)     # (2*CP, M)
            yd = t[:CP, :] + bfd     # 0.25*(branch1+branch5+branch_pool)+biases
            mid = t[CP:, :] + bfm    # branch3 intermediate after its first 3x3
            fill_patches(mid, 9)     # overwrites rows 0:72 only
            # rows 72:K2 still hold stale (finite) stage-A taps 9..15; WB's
            # columns 72:K2 are EXACT zeros by construction, so they add 0.
            y3 = jnp.dot(wb_ref[...], p_ref[0:K2, :],
                         preferred_element_type=jnp.float32)    # (CP, M)
            return yd + y3           # == mean over the 4 stacked branches

        # ---- in_conv: Inception(3 -> C) + ReLU ----
        fea = jnp.maximum(inception(x, wi_ref, wbi_ref, bdi, bmi), 0.0)

        # ---- residual stack (shared weights), statically unrolled ----
        # BN lane reductions are exact because M == N*H*W with no lane padding.
        inv_m = 1.0 / float(M)
        for _ in range(layers):
            y = inception(fea, wr_ref, wbr_ref, bdr, bmr)
            # BatchNorm2d, training mode: batch stats over (N,H,W) per channel,
            # biased variance, weight=1, bias=0, eps=1e-5.  One-pass stats:
            # two independent cross-lane reductions.
            s1 = jnp.sum(y, axis=1, keepdims=True)
            s2 = jnp.sum(y * y, axis=1, keepdims=True)
            mu = s1 * inv_m
            var = jnp.maximum(s2 * inv_m - mu * mu, 0.0)
            yn = (y - mu) * jax.lax.rsqrt(var + 1e-5)
            fea = fea + jnp.maximum(yn, 0.0)

        # ---- out_conv: Inception(C -> 3) + Sigmoid; illu = clamp(out + x) ----
        yo = jax.nn.sigmoid(inception(fea, wo_ref, wbo_ref, bdo, bmo))
        out_ref[...] = jnp.clip(yo + x, 0.0001, 1.0)   # padded rows sliced away outside

    return kernel


def make_pallas_forward(N, H, W, layers, channels):
    assert channels <= CP and IN_CH <= CP
    HW = H * W
    M = N * HW
    assert HW % 128 == 0, "H*W must be a multiple of 128 (lane alignment)"

    kernel = _build_kernel(N, H, W, layers, _roll_is_numpy_like())
    vmem = pl.BlockSpec(memory_space=pltpu.MemorySpace.VMEM)

    # VMEM budget: ins/outs + patch scratch + rough allowance for live values.
    need = 4 * (2 * CP * M + 32 * M + K1 * M + 6 * CP * HW
                + 3 * 2 * CP * K1 + 3 * CP * K2 + 6 * CP * M)
    vmem_limit = int(min(max(2 * need, 32 * 1024 * 1024), 96 * 1024 * 1024))

    call = pl.pallas_call(
        kernel,
        out_shape=jax.ShapeDtypeStruct((CP, M), jnp.float32),
        in_specs=[vmem] * 14,
        out_specs=vmem,
        scratch_shapes=[pltpu.VMEM((K1, M), jnp.float32)],   # im2col slab
        compiler_params=pltpu.CompilerParams(vmem_limit_bytes=vmem_limit),
    )
    # TODO(synk): v7x dual-TensorCore split of the lane axis (pl.core_map with a
    # tiny shared-memory BN partial-sum exchange) is not implemented.

    def forward(x_nchw, kp):
        # lane-dense layout: (channel, n*HW + h*W + w), channels zero-padded to CP
        xf = jnp.transpose(x_nchw.astype(jnp.float32),
                           (1, 0, 2, 3)).reshape(IN_CH, M)
        x_pad = jnp.zeros((CP, M), jnp.float32).at[:IN_CH].set(xf)
        out = call(x_pad, kp["masks"], *kp["in"], *kp["res"], *kp["out"])
        return jnp.transpose(out[:IN_CH].reshape(IN_CH, N, H, W), (1, 0, 2, 3))

    return forward


def enhance_inception_forward(x_nchw, params, layers, channels):
    """Convenience one-shot API (preprocessing + fused kernel)."""
    N, _, H, W = x_nchw.shape
    kp = precompute_kernel_params(params, N, H, W, channels)
    return make_pallas_forward(N, H, W, layers, channels)(x_nchw, kp)


# --------------------------------------------------------------------------
# parameters + a plain-JAX reference of the PyTorch module (for a self check)
# --------------------------------------------------------------------------
def init_inception_params(key, cin, cout, hidden=(4, 4, 4)):
    h0, h1, h2 = hidden
    shapes = {
        "b1_w": (cout, cin), "b1_b": (cout,),
        "b5_w1": (h0, cin), "b5_b1": (h0,),
        "b5_w2": (cout, h0, 5, 5), "b5_b2": (cout,),
        "b3_w1": (h1, cin), "b3_b1": (h1,),
        "b3_w2": (h2, h1, 3, 3), "b3_b2": (h2,),
        "b3_w3": (cout, h2, 3, 3), "b3_b3": (cout,),
        "bp_w": (cout, cin), "bp_b": (cout,),
    }
    keys = jax.random.split(key, len(shapes))
    return {name: 0.1 * jax.random.normal(k, shape, jnp.float32)
            for k, (name, shape) in zip(keys, shapes.items())}


def _conv2d(x, w, b, pad):
    y = jax.lax.conv_general_dilated(
        x, w, window_strides=(1, 1), padding=[(pad, pad), (pad, pad)],
        dimension_numbers=("NCHW", "OIHW", "NCHW"),
        precision=jax.lax.Precision.HIGHEST)
    return y + b[None, :, None, None]


def _inception_ref(x, p):
    y1 = _conv2d(x, p["b1_w"][:, :, None, None], p["b1_b"], 0)
    h = _conv2d(x, p["b5_w1"][:, :, None, None], p["b5_b1"], 0)
    y5 = _conv2d(h, p["b5_w2"], p["b5_b2"], 2)
    g = _conv2d(x, p["b3_w1"][:, :, None, None], p["b3_b1"], 0)
    m = _conv2d(g, p["b3_w2"], p["b3_b2"], 1)
    y3 = _conv2d(m, p["b3_w3"], p["b3_b3"], 1)
    pool = jax.lax.reduce_window(
        x, 0.0, jax.lax.add, (1, 1, 3, 3), (1, 1, 1, 1),
        [(0, 0), (0, 0), (1, 1), (1, 1)]) / 9.0
    yp = _conv2d(pool, p["bp_w"][:, :, None, None], p["bp_b"], 0)
    return (y1 + y5 + y3 + yp) * 0.25


def reference_forward(x, params, layers):
    fea = jnp.maximum(_inception_ref(x, params["in_conv"]), 0.0)
    for _ in range(layers):
        y = _inception_ref(fea, params["conv"])
        mu = jnp.mean(y, axis=(0, 2, 3), keepdims=True)
        var = jnp.mean(jnp.square(y - mu), axis=(0, 2, 3), keepdims=True)
        fea = fea + jnp.maximum((y - mu) * jax.lax.rsqrt(var + 1e-5), 0.0)
    y = jax.nn.sigmoid(_inception_ref(fea, params["out_conv"]))
    return jnp.clip(y + x, 0.0001, 1.0)


# --------------------------------------------------------------------------
if __name__ == "__main__":
    layers, channels = 2, 8
    N, H, W = 2, 16, 16

    key = jax.random.PRNGKey(0)
    k_x, k_in, k_conv, k_out = jax.random.split(key, 4)
    x = jax.random.uniform(k_x, (N, IN_CH, H, W), jnp.float32)
    params = {
        "in_conv": init_inception_params(k_in, IN_CH, channels),
        "conv": init_inception_params(k_conv, channels, channels),
        "out_conv": init_inception_params(k_out, channels, IN_CH),
    }

    # one-time parameter preprocessing (weights are static across calls)
    kparams = jax.block_until_ready(
        precompute_kernel_params(params, N, H, W, channels))

    fwd = jax.jit(make_pallas_forward(N, H, W, layers, channels))
    out = jax.block_until_ready(fwd(x, kparams))

    assert out.shape == (N, IN_CH, H, W), out.shape
    assert float(jnp.min(out)) >= 0.0001 - 1e-6
    assert float(jnp.max(out)) <= 1.0 + 1e-6

    # numerical self-check against a plain-JAX implementation of the module
    ref = reference_forward(x, params, layers)
    err = float(jnp.max(jnp.abs(out - ref)))
    assert err < 5e-3, f"mismatch vs reference: max|diff|={err}"

    print("KERNEL_OK")
</pallas_src>

<mosaic_0001>
module attributes {stable_mosaic.version = 11 : i64} {
  func.func @probe(%arg0: memref<8x128xf32, #tpu.memory_space<vmem>>, %arg1: memref<8x128xf32, #tpu.memory_space<vmem>>) attributes {dimension_semantics = [], scalar_prefetch = 0 : i64, scratch_operands = 0 : i64, tpu.core_type = #tpu.core_type<tc>} {
    %c0 = arith.constant 0 : index
    %c0_0 = arith.constant 0 : index
    %0 = vector.load %arg0[%c0, %c0_0] : memref<8x128xf32, #tpu.memory_space<vmem>>, vector<8x128xf32>
    %c1_i32 = arith.constant 1 : i32
    %1 = tpu.dynamic_rotate %0 by %c1_i32 dim 1 : vector<8x128xf32>, i32 -> vector<8x128xf32>
    %c0_1 = arith.constant 0 : index
    %c0_2 = arith.constant 0 : index
    %2 = vector.load %arg1[%c0_1, %c0_2] : memref<8x128xf32, #tpu.memory_space<vmem>>, vector<8x128xf32>
    tpu.vector_store %arg1[%c0_1, %c0_2], %1 {strides = array<i32>} : memref<8x128xf32, #tpu.memory_space<vmem>>, vector<8x128xf32>,
    return
  }
}

</mosaic_0001>

<bundles_post_ra>
// kernel: tpu_custom_call.1
= control target key start
LH: loop header
LB: loop body
LE: loop exit
PB: predicated region body
PF: predicated region fallthrough
CT: control target
= control target key end

     0   :  { %6 = vsyncpa [#allocation3], 0  ;;  %s128_s0 = inlined_call_operand.hbm [shape: f32[8,128], index: 0, kind: input, shape index: {}]   ;;  %s129_s1 = inlined_call_operand.hbm [shape: f32[8,128], index: 1, kind: output, shape index: {}]  }
   0x1   :  { %7 = vsyncpa [#allocation4], 0  ;;  %s91_s6 = smov [#allocation2]   ;;  %s43_s10 = scalar_lea.hbm %s128_s0, 128 }
   0x2   :  { %s14_s7 = sshll.u32 %s91_s6, 4  ;;  %p44_p0 = scmp.ne.s32.totalorder %s128_s0, %s43_s10  ;;  %s15_s7 = int_to_ptr.vmem [resolvable:$true] %s14_s7 }
   0x3   :  { %p47_p1 = scmp.lt.u32.totalorder %s43_s10, %s128_s0 }
   0x5   :  { %p49_p2 = pnand %p47_p1, %p44_p0 }
   0x7   :  { %52 = shalt.err (!%p49_p2)
}
   0x8   :  { %s53_s15 = scalar_lea.vmem %s15_s7, 128  ;;  %p58_p4 = scmp.lt.s32.totalorder %s15_s7, %s15_s7 }
   0x9   :  { %p54_p3 = scmp.ne.s32.totalorder %s15_s7, %s53_s15  ;;  %p59_p5 = scmp.lt.s32.totalorder %s53_s15, %s53_s15 }
   0xb   :  { %p60_p6 = por %p59_p5, %p58_p4 }
   0xd   :  { %p61_p7 = pnand %p60_p6, %p54_p3 }
   0xf   :  { %64 = shalt.err (!%p61_p7)
}
  0x10   :  { %17 = dma.hbm_to_vmem [thread:$0]  %s128_s0, 128, %s15_s7, [#allocation3]  }
  0x11   :  { %87 = dma.done.wait [#allocation3], 128  }
  0x12   :  { %88 = vsyncadd [#allocation3], 4294967168  ;;  %v21_v0 = vld [vmem:[#allocation2] sm:$0xff]  ;;  %s92_s18 = smov 1   ;;  %s93_s19 = smov [#allocation5]  }
  0x13   :  { %22 = vrot.lane.b32.xlu0 %v21_v0, %s92_s18  ;;  %s31_s20 = sshll.u32 %s93_s19, 4  ;;  %s32_s20 = int_to_ptr.vmem [resolvable:$true] %s31_s20 }
  0x14   :  { %s65_s21 = scalar_lea.vmem %s32_s20, 128  ;;  %p70_p9 = scmp.lt.s32.totalorder %s32_s20, %s32_s20 }
  0x15   :  { %p66_p8 = scmp.ne.s32.totalorder %s32_s20, %s65_s21  ;;  %p71_p10 = scmp.lt.s32.totalorder %s65_s21, %s65_s21 }
  0x17   :  { %p72_p11 = por %p71_p10, %p70_p9 }
  0x19   :  { %p73_p12 = pnand %p72_p11, %p66_p8 }
  0x85   :  { %v23_v1 = vpop.permute.xlu0 %22 }
  0x86   :  { %24 = vst [vmem:[#allocation5] sm:$0xff] %v23_v1 }
  0x87   :  { %76 = shalt.err (!%p73_p12)
}
  0x88   :  { %s77_s0 = scalar_lea.hbm %s129_s1, 128 }
  0x89   :  { %p78_p13 = scmp.ne.s32.totalorder %s129_s1, %s77_s0  ;;  %p81_p0 = scmp.lt.u32.totalorder %s77_s0, %s129_s1 }
  0x8b   :  { %p83_p1 = pnand %p81_p0, %p78_p13 }
  0x8d   :  { %86 = shalt.err (!%p83_p1)
}
  0x8e   :  { %34 = dma.vmem_to_hbm [thread:$0]  %s32_s20, 128, %s129_s1, [#allocation4]  }
  0x8f   :  { %89 = dma.done.wait [#allocation4], 128  }
  0x90   :  { %90 = vsyncadd [#allocation4], 4294967168 }
  0x91   :  { %38 = vsyncpa [#allocation3], 1 }
  0x92   :  { %39 = vsyncpa [#allocation4], 1 }

</bundles_post_ra>
